<compile_context>
chip_gen: v5e
topology: v5e:2x2
jax: 0.10.0
libtpu: 0.0.40
codegen_flags: <defaults>
</compile_context>

<pallas_src>
import math

import jax
import jax.numpy as jnp
from jax import lax
from jax.experimental import pallas as pl
from jax.experimental.pallas import tpu as pltpu


def _round_up(x, m):
    return ((x + m - 1) // m) * m


# --------------------------------------------------------------------------
# Kernel 1: embed  (GraphiteBlock: H = l1(Z, Z); Zf = l2(Z, H)), tiny shapes.
# --------------------------------------------------------------------------
def _graphite_layer(Z, H, WT, n_float):
    """One GraphiteLayer (act = relu, linear has no bias).

    Z : (n, k)    "structure" input (always the latent Z)
    H : (n, in)   feature input
    WT: (in, out) transposed nn.Linear weight  (HW = H @ W.T = H @ WT)
    """
    # HW = self.linear(H)
    HW = jnp.dot(H, WT, preferred_element_type=jnp.float32)

    # ---- prepare_Z(Z) ----
    # normalise(Z, dim=1): rsqrt + multiply (no divide)
    Zn = Z * lax.rsqrt(jnp.sum(Z * Z, axis=1, keepdims=True))
    # get_degree(Zn) = (Zn * Zn.sum(0, keepdims)).sum(1)
    deg_z = jnp.sum(Zn * jnp.sum(Zn, axis=0, keepdims=True), axis=1, keepdims=True)
    # get_degree(normalise(ones(n,k))) == n exactly  ->  no ones matrix needed
    mult = lax.rsqrt(deg_z + n_float)          # degree ** (-0.5), shape (n, 1)
    Z_ = Zn * mult

    # update_from_Z = Z_ @ (Z_.T @ HW)
    contract_first = (((0,), (0,)), ((), ()))  # X.T @ Y without explicit transpose
    upd_z = jnp.dot(
        Z_,
        lax.dot_general(Z_, HW, contract_first, preferred_element_type=jnp.float32),
        preferred_element_type=jnp.float32,
    )
    # update_from_1 = ones_ @ (ones_.T @ HW) == mult * sum_i(mult_i * HW_i)
    upd_1 = mult * jnp.sum(mult * HW, axis=0, keepdims=True)

    # activation: relu
    return jnp.maximum(upd_z + upd_1, 0.0)


def _embed_kernel(z_ref, w1t_ref, w2t_ref, zf_ref):
    Z = z_ref[...]          # (n, latent)
    W1T = w1t_ref[...]      # (latent, hidden)
    W2T = w2t_ref[...]      # (hidden, final)

    n = Z.shape[0]
    n_f = jnp.float32(n)

    H1 = _graphite_layer(Z, Z, W1T, n_f)       # (n, hidden)
    Zf = _graphite_layer(Z, H1, W2T, n_f)      # (n, final)
    zf_ref[...] = Zf


def _embed(Z, W1T, W2T):
    n = Z.shape[0]
    final_dim = W2T.shape[1]
    vmem = pl.BlockSpec(memory_space=pltpu.MemorySpace.VMEM)
    # Whole-array VMEM residency: each (n, <=16) f32 array really occupies
    # n * 128 lanes * 4 B; keep a generous-but-bounded scoped-VMEM limit.
    # TODO(synk): row-tile _embed with a two-pass column reduction for very
    # large n (>~40k on v7x's 64 MiB VMEM); not needed at these shapes.
    est = 10 * _round_up(n, 8) * 128 * 4 + (4 << 20)
    vmem_limit = min(max(est, 16 << 20), 48 << 20)
    return pl.pallas_call(
        _embed_kernel,
        out_shape=jax.ShapeDtypeStruct((n, final_dim), jnp.float32),
        in_specs=[vmem, vmem, vmem],
        out_specs=vmem,
        compiler_params=pltpu.CompilerParams(vmem_limit_bytes=vmem_limit),
    )(Z, W1T, W2T)


# --------------------------------------------------------------------------
# Kernel 2: tiled probs = sigmoid(Zf @ Zf.T)  -- the only O(n^2) phase.
# --------------------------------------------------------------------------
def _probs_kernel(a_ref, bt_ref, out_ref):
    # a_ref: (tm, f) rows i of Zf; bt_ref: (f, tn) columns j of Zf.T
    logits = jnp.dot(a_ref[...], bt_ref[...], preferred_element_type=jnp.float32)
    # sigmoid(x) = 0.5 * (tanh(x / 2) + 1): one EUP op/elem instead of exp+recip.
    # tanh stays f32 (portable to v5e); only the store casts to out dtype.
    out_ref[...] = (0.5 * jnp.tanh(0.5 * logits) + 0.5).astype(out_ref.dtype)


def _tiled_probs(Zf, ZfT, out_dtype=jnp.float32, tile_bytes=4 << 20, max_tn=2048):
    n, f = Zf.shape
    esize = jnp.dtype(out_dtype).itemsize
    sub = 16 if esize == 2 else 8            # bf16 packs 16 sublanes per vreg

    # Lane-wide output tile: full (128-padded) row when it fits, else max_tn.
    n_lanes = _round_up(n, 128)
    tn = n_lanes if n_lanes <= max_tn else max_tn

    # Pick tm so the output tile is ~tile_bytes, never larger than the
    # (padded) array, and keep >=2 row blocks when possible so the second
    # v7x TensorCore has work under "parallel" semantics.
    tm = tile_bytes // (tn * esize)
    tm = min(tm, _round_up(n, sub))
    tm = min(tm, _round_up(-(-n // 2), sub))
    tm = max(sub, (tm // sub) * sub)

    grid = (pl.cdiv(n, tm), pl.cdiv(n, tn))

    # Double-buffered out tile + LHS (lane-padded to 128) + RHS, plus slack.
    vmem_needed = (2 * tm * tn * esize
                   + 2 * tm * 128 * 4
                   + 2 * _round_up(f, 8) * tn * 4
                   + (2 << 20))
    vmem_limit = min(max(vmem_needed, 16 << 20), 48 << 20)

    return pl.pallas_call(
        _probs_kernel,
        out_shape=jax.ShapeDtypeStruct((n, n), out_dtype),
        grid=grid,
        in_specs=[
            pl.BlockSpec((tm, f), lambda i, j: (i, 0)),   # Zf row-block i
            pl.BlockSpec((f, tn), lambda i, j: (0, j)),   # ZfT col-block j (lane-dense)
        ],
        out_specs=pl.BlockSpec((tm, tn), lambda i, j: (i, j)),
        compiler_params=pltpu.CompilerParams(
            dimension_semantics=("parallel", "parallel"),
            vmem_limit_bytes=vmem_limit),
    )(Zf, ZfT)


# --------------------------------------------------------------------------
# Public wrapper
# --------------------------------------------------------------------------
def graphite_paper_decoder_probs(Z, W1, W2, out_dtype=jnp.float32,
                                 tile_bytes=4 << 20, max_tn=2048):
    """Z: (n, latent).  W1: (hidden, latent), W2: (final, hidden) nn.Linear weights.

    Returns probs = sigmoid(Zf @ Zf.T), the parameter of the Bernoulli the
    PyTorch forward constructs.  out_dtype=jnp.bfloat16 halves HBM writeback
    (the binding resource) on v6e/v7x when downstream tolerates it.
    """
    Z = Z.astype(jnp.float32)
    W1T = W1.T.astype(jnp.float32)   # (latent, hidden)
    W2T = W2.T.astype(jnp.float32)   # (hidden, final)
    Zf = _embed(Z, W1T, W2T)         # (n, final) -- tiny, single program
    ZfT = Zf.T                       # (final, n): pre-transpose once, lane-dense RHS
    return _tiled_probs(Zf, ZfT, out_dtype=out_dtype,
                        tile_bytes=tile_bytes, max_tn=max_tn)
    # TODO(synk): the torch.distributions.Bernoulli wrapper itself has no array
    # equivalent; callers consume `probs` directly.


# --------------------------------------------------------------------------
# Pure-JAX reference mirroring the PyTorch forward (explicit `ones` path).
# --------------------------------------------------------------------------
def _reference_probs(Z, W1, W2):
    def prepare_Z(Zx):
        nn_, k = Zx.shape
        Zn = Zx / jnp.linalg.norm(Zx, axis=1, keepdims=True)
        ones = jnp.full((nn_, k), 1.0, dtype=Zx.dtype)
        ones = ones / jnp.linalg.norm(ones, axis=1, keepdims=True)
        deg = lambda X: jnp.sum(X * jnp.sum(X, axis=0, keepdims=True), axis=1)
        degree = (deg(Zn) + deg(ones)).reshape(nn_, 1)
        mult = degree ** -0.5
        return Zn * mult, ones * mult

    def layer(Zx, Hx, W):
        HW = Hx @ W.T
        Z_, ones_ = prepare_Z(Zx)
        out = Z_ @ (Z_.T @ HW) + ones_ @ (ones_.T @ HW)
        return jnp.maximum(out, 0.0)

    H1 = layer(Z, Z, W1)
    Zf = layer(Z, H1, W2)
    return jax.nn.sigmoid(Zf @ Zf.T)


if __name__ == "__main__":
    key = jax.random.PRNGKey(0)

    def make_case(case_key, n, latent, hidden, final):
        kz, k1, k2 = jax.random.split(case_key, 3)
        Zc = jax.random.normal(kz, (n, latent), dtype=jnp.float32)
        # nn.Linear(in, out, bias=False) weight shape: (out, in)
        W1c = jax.random.normal(k1, (hidden, latent), dtype=jnp.float32) / math.sqrt(latent)
        W2c = jax.random.normal(k2, (final, hidden), dtype=jnp.float32) / math.sqrt(hidden)
        return Zc, W1c, W2c

    # (n, latent_dim, hidden_dim, final_dim): small case matching the spec
    # (n=20, k=6) plus a mid-size case that exercises the 2-D tiled output path
    # including partial edge tiles and the full-row (tn = padded n) tile choice.
    cases = [(20, 6, 16, 8), (640, 6, 16, 8)]
    keys = jax.random.split(key, len(cases))
    for case_key, (n, latent, hidden, final) in zip(keys, cases):
        Z, W1, W2 = make_case(case_key, n, latent, hidden, final)
        probs = graphite_paper_decoder_probs(Z, W1, W2)
        jax.block_until_ready(probs)

        ref = _reference_probs(Z, W1, W2)
        assert probs.shape == (n, n)
        assert jnp.allclose(probs, ref, atol=1e-4, rtol=1e-4), f"mismatch vs reference (n={n})"

    # bf16-output path (halved HBM writeback): exercise once on the larger case.
    Z, W1, W2 = make_case(keys[-1], 640, 6, 16, 8)
    probs_bf16 = graphite_paper_decoder_probs(Z, W1, W2, out_dtype=jnp.bfloat16)
    jax.block_until_ready(probs_bf16)
    ref = _reference_probs(Z, W1, W2)
    assert probs_bf16.dtype == jnp.bfloat16
    assert jnp.allclose(probs_bf16.astype(jnp.float32), ref, atol=1e-2, rtol=1e-2), \
        "bf16 output mismatch vs reference"

    print("KERNEL_OK")
</pallas_src>

<mosaic_0001>
module attributes {stable_mosaic.version = 11 : i64} {
  func.func @_embed_kernel(%arg0: memref<20x6xf32, #tpu.memory_space<vmem>>, %arg1: memref<6x16xf32, #tpu.memory_space<vmem>>, %arg2: memref<16x8xf32, #tpu.memory_space<vmem>>, %arg3: memref<20x8xf32, #tpu.memory_space<vmem>>) attributes {dimension_semantics = [], scalar_prefetch = 0 : i64, scratch_operands = 0 : i64, tpu.core_type = #tpu.core_type<tc>} {
    %c0 = arith.constant 0 : index
    %c0_0 = arith.constant 0 : index
    %0 = vector.load %arg0[%c0, %c0_0] : memref<20x6xf32, #tpu.memory_space<vmem>>, vector<20x6xf32>
    %c0_1 = arith.constant 0 : index
    %c0_2 = arith.constant 0 : index
    %1 = vector.load %arg1[%c0_1, %c0_2] : memref<6x16xf32, #tpu.memory_space<vmem>>, vector<6x16xf32>
    %c0_3 = arith.constant 0 : index
    %c0_4 = arith.constant 0 : index
    %2 = vector.load %arg2[%c0_3, %c0_4] : memref<16x8xf32, #tpu.memory_space<vmem>>, vector<16x8xf32>
    %cst = arith.constant dense<0.000000e+00> : vector<20x16xf32>
    %3 = tpu.matmul %0, %1, %cst {dimension_numbers = #tpu.dot_dimension_numbers<[1], [0], [0], [1], [0, 0, 1, 1], [], []>} : vector<20x6xf32>, vector<6x16xf32>, vector<20x16xf32> -> vector<20x16xf32>
    %4 = arith.mulf %0, %0 : vector<20x6xf32>
    %cst_5 = arith.constant dense<0.000000e+00> : vector<20xf32>
    %5 = vector.multi_reduction <add>, %4, %cst_5 [1] : vector<20x6xf32> to vector<20xf32>
    %6 = vector.shape_cast %5 : vector<20xf32> to vector<20x1xf32>
    %7 = math.rsqrt %6 : vector<20x1xf32>
    %8 = vector.broadcast %7 : vector<20x1xf32> to vector<20x6xf32>
    %9 = arith.mulf %0, %8 : vector<20x6xf32>
    %cst_6 = arith.constant dense<0.000000e+00> : vector<6xf32>
    %10 = vector.multi_reduction <add>, %9, %cst_6 [0] : vector<20x6xf32> to vector<6xf32>
    %11 = vector.shape_cast %10 : vector<6xf32> to vector<1x6xf32>
    %12 = vector.broadcast %11 : vector<1x6xf32> to vector<20x6xf32>
    %13 = arith.mulf %9, %12 : vector<20x6xf32>
    %cst_7 = arith.constant dense<0.000000e+00> : vector<20xf32>
    %14 = vector.multi_reduction <add>, %13, %cst_7 [1] : vector<20x6xf32> to vector<20xf32>
    %15 = vector.shape_cast %14 : vector<20xf32> to vector<20x1xf32>
    %cst_8 = arith.constant 2.000000e+01 : f32
    %16 = vector.broadcast %cst_8 : f32 to vector<20x1xf32>
    %17 = arith.addf %15, %16 : vector<20x1xf32>
    %18 = math.rsqrt %17 : vector<20x1xf32>
    %19 = vector.broadcast %18 : vector<20x1xf32> to vector<20x6xf32>
    %20 = arith.mulf %9, %19 : vector<20x6xf32>
    %cst_9 = arith.constant dense<0.000000e+00> : vector<6x16xf32>
    %21 = tpu.matmul %20, %3, %cst_9 {dimension_numbers = #tpu.dot_dimension_numbers<[0], [0], [1], [1], [0, 1, 1, 1], [], []>} : vector<20x6xf32>, vector<20x16xf32>, vector<6x16xf32> -> vector<6x16xf32>
    %cst_10 = arith.constant dense<0.000000e+00> : vector<20x16xf32>
    %22 = tpu.matmul %20, %21, %cst_10 {dimension_numbers = #tpu.dot_dimension_numbers<[1], [0], [0], [1], [0, 0, 1, 1], [], []>} : vector<20x6xf32>, vector<6x16xf32>, vector<20x16xf32> -> vector<20x16xf32>
    %23 = vector.broadcast %18 : vector<20x1xf32> to vector<20x16xf32>
    %24 = arith.mulf %23, %3 : vector<20x16xf32>
    %cst_11 = arith.constant dense<0.000000e+00> : vector<16xf32>
    %25 = vector.multi_reduction <add>, %24, %cst_11 [0] : vector<20x16xf32> to vector<16xf32>
    %26 = vector.shape_cast %25 : vector<16xf32> to vector<1x16xf32>
    %27 = vector.broadcast %18 : vector<20x1xf32> to vector<20x16xf32>
    %28 = vector.broadcast %26 : vector<1x16xf32> to vector<20x16xf32>
    %29 = arith.mulf %27, %28 : vector<20x16xf32>
    %30 = arith.addf %22, %29 : vector<20x16xf32>
    %cst_12 = arith.constant 0.000000e+00 : f32
    %31 = vector.broadcast %cst_12 : f32 to vector<20x16xf32>
    %32 = arith.maximumf %30, %31 : vector<20x16xf32>
    %cst_13 = arith.constant dense<0.000000e+00> : vector<20x8xf32>
    %33 = tpu.matmul %32, %2, %cst_13 {dimension_numbers = #tpu.dot_dimension_numbers<[1], [0], [0], [1], [0, 0, 1, 1], [], []>} : vector<20x16xf32>, vector<16x8xf32>, vector<20x8xf32> -> vector<20x8xf32>
    %34 = arith.mulf %0, %0 : vector<20x6xf32>
    %cst_14 = arith.constant dense<0.000000e+00> : vector<20xf32>
    %35 = vector.multi_reduction <add>, %34, %cst_14 [1] : vector<20x6xf32> to vector<20xf32>
    %36 = vector.shape_cast %35 : vector<20xf32> to vector<20x1xf32>
    %37 = math.rsqrt %36 : vector<20x1xf32>
    %38 = vector.broadcast %37 : vector<20x1xf32> to vector<20x6xf32>
    %39 = arith.mulf %0, %38 : vector<20x6xf32>
    %cst_15 = arith.constant dense<0.000000e+00> : vector<6xf32>
    %40 = vector.multi_reduction <add>, %39, %cst_15 [0] : vector<20x6xf32> to vector<6xf32>
    %41 = vector.shape_cast %40 : vector<6xf32> to vector<1x6xf32>
    %42 = vector.broadcast %41 : vector<1x6xf32> to vector<20x6xf32>
    %43 = arith.mulf %39, %42 : vector<20x6xf32>
    %cst_16 = arith.constant dense<0.000000e+00> : vector<20xf32>
    %44 = vector.multi_reduction <add>, %43, %cst_16 [1] : vector<20x6xf32> to vector<20xf32>
    %45 = vector.shape_cast %44 : vector<20xf32> to vector<20x1xf32>
    %cst_17 = arith.constant 2.000000e+01 : f32
    %46 = vector.broadcast %cst_17 : f32 to vector<20x1xf32>
    %47 = arith.addf %45, %46 : vector<20x1xf32>
    %48 = math.rsqrt %47 : vector<20x1xf32>
    %49 = vector.broadcast %48 : vector<20x1xf32> to vector<20x6xf32>
    %50 = arith.mulf %39, %49 : vector<20x6xf32>
    %cst_18 = arith.constant dense<0.000000e+00> : vector<6x8xf32>
    %51 = tpu.matmul %50, %33, %cst_18 {dimension_numbers = #tpu.dot_dimension_numbers<[0], [0], [1], [1], [0, 1, 1, 1], [], []>} : vector<20x6xf32>, vector<20x8xf32>, vector<6x8xf32> -> vector<6x8xf32>
    %cst_19 = arith.constant dense<0.000000e+00> : vector<20x8xf32>
    %52 = tpu.matmul %50, %51, %cst_19 {dimension_numbers = #tpu.dot_dimension_numbers<[1], [0], [0], [1], [0, 0, 1, 1], [], []>} : vector<20x6xf32>, vector<6x8xf32>, vector<20x8xf32> -> vector<20x8xf32>
    %53 = vector.broadcast %48 : vector<20x1xf32> to vector<20x8xf32>
    %54 = arith.mulf %53, %33 : vector<20x8xf32>
    %cst_20 = arith.constant dense<0.000000e+00> : vector<8xf32>
    %55 = vector.multi_reduction <add>, %54, %cst_20 [0] : vector<20x8xf32> to vector<8xf32>
    %56 = vector.shape_cast %55 : vector<8xf32> to vector<1x8xf32>
    %57 = vector.broadcast %48 : vector<20x1xf32> to vector<20x8xf32>
    %58 = vector.broadcast %56 : vector<1x8xf32> to vector<20x8xf32>
    %59 = arith.mulf %57, %58 : vector<20x8xf32>
    %60 = arith.addf %52, %59 : vector<20x8xf32>
    %cst_21 = arith.constant 0.000000e+00 : f32
    %61 = vector.broadcast %cst_21 : f32 to vector<20x8xf32>
    %62 = arith.maximumf %60, %61 : vector<20x8xf32>
    %c0_22 = arith.constant 0 : index
    %c0_23 = arith.constant 0 : index
    %63 = vector.load %arg3[%c0_22, %c0_23] : memref<20x8xf32, #tpu.memory_space<vmem>>, vector<20x8xf32>
    tpu.vector_store %arg3[%c0_22, %c0_23], %62 {strides = array<i32>} : memref<20x8xf32, #tpu.memory_space<vmem>>, vector<20x8xf32>,
    return
  }
}

</mosaic_0001>

<bundles_post_ra>
// kernel: tpu_custom_call.1
= control target key start
LH: loop header
LB: loop body
LE: loop exit
PB: predicated region body
PF: predicated region fallthrough
CT: control target
= control target key end

     0   :  { %vm69_vm0 = vcmask 44032   ;;  %vm20_vm1 = vcmask 48128   ;;  %vm30_vm2 = vcmask 1045504   ;;  %vm201_vm12 = vcmask 1043456   ;;  %s568_s0 = inlined_call_operand.vmem [shape: f32[20,6], index: 0, kind: input, shape index: {}]   ;;  %s569_s1 = inlined_call_operand.vmem [shape: f32[6,16], index: 1, kind: input, shape index: {}]   ;;  %s570_s2 = inlined_call_operand.vmem [shape: f32[16,8], index: 2, kind: input, shape index: {}]   ;;  %s571_s3 = inlined_call_operand.vmem [shape: f32[20,8], index: 3, kind: output, shape index: {}]  }
   0x1   :  { %v456_v0 = vld [vmem:[%s568_s0 + $0x10] sm:$0xf]  ;;  %v14_v1 = vld [vmem:[%s568_s0] sm:$0xff]  ;;  %v15_v4 = vld [vmem:[%s568_s0 + $0x8] sm:$0xff] }
   0x2   :  { %v62_v2 = vmul.f32 %v456_v0, %v456_v0  ;;  %v60_v3 = vmul.f32 %v14_v1, %v14_v1  ;;  %v61_v7 = vmul.f32 %v15_v4, %v15_v4  ;;  %v17_v24 = vld [vmem:[%s569_s1] sm:$0x3f] }
   0x3   :  { %401 = vmatpush.msk.msra.mxu0 %vm30_vm2, %v17_v24 }
   0x4   :  { %v70_v5 = vsel %vm69_vm0, %v62_v2, 0.0  ;;  %v63_v6 = vsel %vm20_vm1, %v60_v3, 0.0  ;;  %v66_v8 = vsel %vm20_vm1, %v61_v7, 0.0  ;;  %402 = vmatmul.msk.f32.vlgmr.msra.gmra.mxu0 %vm20_vm1, %v14_v1 }
   0x5   :  { %71 = vadd.xlane.f32.xlu1 %v70_v5  ;;  %64 = vadd.xlane.f32.xlu0 %v63_v6 }
   0xc   :  { %403 = vmatmul.msk.f32.gmra.mxu0 %vm20_vm1, %v15_v4 }
   0xd   :  { %67 = vadd.xlane.f32.xlu0 %v66_v8 }
  0x14   :  { %404 = vmatmul.msk.f32.gmra.mxu0 %vm20_vm1, %v456_v0 }
  0x78   :  { %v72_v9 = vpop.xlane.xlu1 %71  ;;  %v65_v10 = vpop.xlane.xlu0 %64 }
  0x79   :  { %421 = vrsqrt.f32 %v72_v9  ;;  %vm99_vm4 = vweird.f32 %v72_v9  ;;  %vm79_vm6 = vweird.f32 %v65_v10 }
  0x7a   :  { %423 = vrsqrt.f32 %v65_v10 }
  0x7f   :  { %v422_v11 = vpop.eup %421 }
  0x80   :  { %v424_v12 = vpop.eup %423  ;;  %v94_v13 = vmul.f32 %v422_v11, %v72_v9  ;;  %v68_v14 = vpop.xlane.xlu0 %67  ;;  %vm100_vm5 = vweird.f32 %v422_v11 }
  0x81   :  { %v74_v15 = vmul.f32 %v424_v12, %v65_v10  ;;  %425 = vrsqrt.f32 %v68_v14  ;;  %vm80_vm3 = vweird.f32 %v424_v12  ;;  %vm101_vm9 = vmor %vm99_vm4, %vm100_vm5  ;;  %vm89_vm10 = vweird.f32 %v68_v14  ;;  %v51_v54 = vpop.f32.mrf.mxu0 }
  0x82   :  { %v95_v16 = vmul.f32 %v422_v11, %v94_v13  ;;  %vm81_vm7 = vmor %vm79_vm6, %vm80_vm3  ;;  %vm228_vm5 = vcmask 130048  }
  0x83   :  { %v75_v17 = vmul.f32 %v424_v12, %v74_v15 }
  0x84   :  { %v96_v18 = vmul.f32 0.5, %v95_v16 }
  0x85   :  { %v76_v19 = vmul.f32 0.5, %v75_v17 }
  0x86   :  { %v97_v22 = vsub.f32 1.5, %v96_v18 }
  0x87   :  { %v426_v20 = vpop.eup %425  ;;  %v77_v21 = vsub.f32 1.5, %v76_v19 }
  0x88   :  { %v84_v23 = vmul.f32 %v426_v20, %v68_v14  ;;  %v98_v27 = vmul.f32 %v422_v11, %v97_v22  ;;  %vm90_vm8 = vweird.f32 %v426_v20 }
  0x89   :  { %v78_v25 = vmul.f32 %v424_v12, %v77_v21  ;;  %vm91_vm11 = vmor %vm89_vm10, %vm90_vm8  ;;  %v54_v55 = vpop.f32.mrf.mxu0  ;;  %vm232_vm10 = vcmask 125952  }
  0x8a   :  { %v85_v26 = vmul.f32 %v426_v20, %v84_v23  ;;  %v102_v31 = vsel %vm101_vm9, %v422_v11, %v98_v27  ;;  %vm197_vm9 = vcmask 162816  }
  0x8b   :  { %v82_v29 = vsel %vm81_vm7, %v424_v12, %v78_v25  ;;  %v477_v35 = vmul.f32 %v102_v31, %v456_v0 }
  0x8c   :  { %v86_v28 = vmul.f32 0.5, %v85_v26  ;;  %v474_v33 = vmul.f32 %v82_v29, %v14_v1 }
  0x8d   :  { %v109_v40 = vsel %vm69_vm0, %v477_v35, 0.0 }
  0x8e   :  { %v87_v30 = vsub.f32 1.5, %v86_v28  ;;  %v106_v37 = vsel %vm20_vm1, %v474_v33, 0.0 }
  0x90   :  { %v88_v32 = vmul.f32 %v426_v20, %v87_v30 }
  0x91   :  { %v57_v61 = vpop.f32.mrf.mxu0 }
  0x92   :  { %v92_v34 = vsel %vm91_vm11, %v426_v20, %v88_v32  ;;  %405 = vmatpush.msk.msrb.mxu0 %vm201_vm12, %v57_v61  ;;  %v19_v32 = vld [vmem:[%s570_s2 + $0x8] sm:$0xff]  ;;  %vm346_vm11 = vcmask 64512  }
  0x93   :  { %v479_v36 = vmul.f32 %v92_v34, %v15_v4  ;;  %308 = vmatpush.msra.mxu3 %v19_v32  ;;  %v18_v34 = vld [vmem:[%s570_s2] sm:$0xff] }
  0x94   :  { %219 = vmatpush.msrb.mxu0 %v54_v55 }
  0x95   :  { %v107_v38 = vsel %vm20_vm1, %v479_v36, 0.0  ;;  %309 = vmatpush.msra.mxu3 %v18_v34 }
  0x96   :  { %v108_v39 = vadd.f32 %v107_v38, %v106_v37  ;;  %220 = vmatpush.msrb.mxu0 %v51_v54 }
  0x98   :  { %v110_v41 = vadd.f32 %v109_v40, %v108_v39 }
  0x9a   :  { %v111_v42 = vrot.slane %v110_v41, 4 }
  0x9c   :  { %v112_v43 = vadd.f32 %v111_v42, %v110_v41 }
  0x9e   :  { %v113_v44 = vrot.slane %v112_v43, 2 }
  0xa0   :  { %v114_v45 = vadd.f32 %v113_v44, %v112_v43 }
  0xa2   :  { %v115_v46 = vrot.slane %v114_v45, 1 }
  0xa4   :  { %v116_v47 = vadd.f32 %v115_v46, %v114_v45 }
  0xa6   :  { %v118_v48 = vmul.f32 %v116_v47, %v479_v36  ;;  %v117_v49 = vmul.f32 %v116_v47, %v474_v33  ;;  %v119_v52 = vmul.f32 %v116_v47, %v477_v35 }
  0xa8   :  { %v123_v50 = vsel %vm20_vm1, %v118_v48, 0.0  ;;  %v120_v51 = vsel %vm20_vm1, %v117_v49, 0.0  ;;  %v126_v53 = vsel %vm69_vm0, %v119_v52, 0.0 }
  0xa9   :  { %124 = vadd.xlane.f32.xlu2 %v123_v50  ;;  %121 = vadd.xlane.f32.xlu1 %v120_v51 }
  0xb1   :  { %127 = vadd.xlane.f32.xlu2 %v126_v53 }
 0x11c   :  { %v125_v56 = vpop.xlane.xlu2 %124  ;;  %v122_v57 = vpop.xlane.xlu1 %121 }
 0x11d   :  { %v130_v58 = vadd.f32 20.0, %v125_v56  ;;  %v129_v59 = vadd.f32 20.0, %v122_v57 }
 0x11f   :  { %427 = vrsqrt.f32 %v130_v58  ;;  %vm148_vm15 = vweird.f32 %v130_v58  ;;  %vm138_vm3 = vweird.f32 %v129_v59 }
 0x120   :  { %429 = vrsqrt.f32 %v129_v59 }
 0x124   :  { %v128_v60 = vpop.xlane.xlu2 %127 }
 0x125   :  { %v428_v62 = vpop.eup %427  ;;  %v131_v63 = vadd.f32 20.0, %v128_v60 }
 0x126   :  { %v430_v0 = vpop.eup %429  ;;  %v143_v1 = vmul.f32 %v428_v62, %v130_v58  ;;  %vm149_vm13 = vweird.f32 %v428_v62 }
 0x127   :  { %v133_v2 = vmul.f32 %v430_v0, %v129_v59  ;;  %431 = vrsqrt.f32 %v131_v63  ;;  %vm139_vm14 = vweird.f32 %v430_v0  ;;  %vm150_vm0 = vmor %vm148_vm15, %vm149_vm13  ;;  %vm158_vm7 = vweird.f32 %v131_v63 }
 0x128   :  { %v144_v3 = vmul.f32 %v428_v62, %v143_v1  ;;  %vm140_vm4 = vmor %vm138_vm3, %vm139_vm14  ;;  %vm350_vm13 = vcmask 60416  }
 0x129   :  { %v134_v4 = vmul.f32 %v430_v0, %v133_v2 }
 0x12a   :  { %v145_v5 = vmul.f32 0.5, %v144_v3 }
 0x12b   :  { %v135_v6 = vmul.f32 0.5, %v134_v4 }
 0x12c   :  { %v146_v7 = vsub.f32 1.5, %v145_v5 }
 0x12d   :  { %v432_v8 = vpop.eup %431  ;;  %v136_v9 = vsub.f32 1.5, %v135_v6 }
 0x12e   :  { %v147_v10 = vmul.f32 %v428_v62, %v146_v7  ;;  %v153_v11 = vmul.f32 %v432_v8, %v131_v63  ;;  %vm159_vm6 = vweird.f32 %v432_v8 }
 0x12f   :  { %v137_v12 = vmul.f32 %v430_v0, %v136_v9  ;;  %vm160_vm8 = vmor %vm158_vm7, %vm159_vm6 }
 0x130   :  { %v154_v13 = vmul.f32 %v432_v8, %v153_v11  ;;  %v497_v14 = vsel %vm150_vm0, %v428_v62, %v147_v10 }
 0x131   :  { %v499_v15 = vsel %vm140_vm4, %v430_v0, %v137_v12  ;;  %v226_v16 = vmul.f32 %v497_v14, %v54_v55  ;;  %v512_v24 = vmul.f32 %v497_v14, %v479_v36 }
 0x132   :  { %v225_v17 = vmul.f32 %v499_v15, %v51_v54  ;;  %v505_v18 = vmul.f32 %v499_v15, %v474_v33  ;;  %v155_v19 = vmul.f32 0.5, %v154_v13 }
 0x133   :  { %v230_v20 = vsel %vm228_vm5, %v226_v16, 0.0 }
 0x134   :  { %v229_v21 = vsel %vm228_vm5, %v225_v17, 0.0  ;;  %165 = vxpose.xlu0.b32.start [1/3] (short) (narrow) %v505_v18, 8  ;;  %v156_v23 = vsub.f32 1.5, %v155_v19 }
 0x135   :  { %v231_v22 = vadd.f32 %v230_v20, %v229_v21 }
 0x136   :  { %v157_v25 = vmul.f32 %v432_v8, %v156_v23 }
 0x138   :  { %v515_v26 = vsel %vm160_vm8, %v432_v8, %v157_v25 }
 0x139   :  { %v164_v27 = vmul.f32 %v515_v26, %v477_v35  ;;  %v227_v30 = vmul.f32 %v515_v26, %v57_v61 }
 0x13b   :  { %v233_v31 = vsel %vm232_vm10, %v227_v30, 0.0 }
 0x13c   :  { %166 = vxpose.xlu0.b32.cont [2/3] (short) (narrow) %v512_v24, 8  ;;  %v234_v33 = vadd.f32 %v233_v31, %v231_v22 }
 0x13e   :  { %v235_v35 = vrot.slane %v234_v33, 4 }
 0x140   :  { %v236_v36 = vadd.f32 %v235_v35, %v234_v33 }
 0x142   :  { %v237_v37 = vrot.slane %v236_v36, 2 }
 0x144   :  { %167 = vxpose.xlu0.b32.end [3/3] (short) (narrow) %v164_v27, 8  ;;  %v238_v38 = vadd.f32 %v237_v37, %v236_v36 }
 0x146   :  { %v239_v39 = vrot.slane %v238_v38, 1 }
 0x148   :  { %v240_v40 = vadd.f32 %v239_v39, %v238_v38 }
 0x14a   :  { %v241_v41 = vmul.f32 %v240_v40, %v499_v15  ;;  %v242_v45 = vmul.f32 %v240_v40, %v497_v14  ;;  %v243_v49 = vmul.f32 %v240_v40, %v515_v26 }
 0x1d8   :  { %v181_v28 = vpop.trf.xlu0 }
 0x1d9   :  { %406 = vmatmul.msk.f32.vlgmr.msrb.gmra.mxu0 %vm197_vm9, %v181_v28 }
 0x256   :  { %v222_v29 = vpop.f32.mrf.mxu0 }
 0x257   :  { %407 = vmatpush.msk.msra.mxu2 %vm30_vm2, %v222_v29 }
 0x258   :  { %408 = vmatmul.msk.f32.vlgmr.msra.gmra.mxu2 %vm20_vm1, %v505_v18 }
 0x260   :  { %409 = vmatmul.msk.f32.gmra.mxu2 %vm20_vm1, %v512_v24 }
 0x268   :  { %410 = vmatmul.msk.f32.gmra.mxu2 %vm20_vm1, %v164_v27 }
 0x2db   :  { %v273_v42 = vpop.f32.mrf.mxu2 }
 0x2dc   :  { %v274_v43 = vadd.f32 %v273_v42, %v241_v41 }
 0x2de   :  { %v282_v44 = vmax.f32 %v274_v43, 0.0 }
 0x2e0   :  { %411 = vmatmul.msk.f32.vlgmr.msra.gmra.mxu3 %vm228_vm5, %v282_v44 }
 0x2e3   :  { %v276_v46 = vpop.f32.mrf.mxu2 }
 0x2e4   :  { %v277_v47 = vadd.f32 %v276_v46, %v242_v45 }
 0x2e6   :  { %v283_v48 = vmax.f32 %v277_v47, 0.0 }
 0x2e8   :  { %412 = vmatmul.msk.f32.gmra.mxu3 %vm228_vm5, %v283_v48 }
 0x2eb   :  { %v279_v50 = vpop.f32.mrf.mxu2 }
 0x2ec   :  { %v280_v51 = vadd.f32 %v279_v50, %v243_v49 }
 0x2ee   :  { %v284_v52 = vmax.f32 %v280_v51, 0.0 }
 0x2f0   :  { %413 = vmatmul.msk.f32.gmra.mxu3 %vm228_vm5, %v284_v52 }
 0x363   :  { %v311_v53 = vpop.f32.mrf.mxu3 }
 0x364   :  { %v343_v54 = vmul.f32 %v311_v53, %v499_v15 }
 0x366   :  { %v347_v57 = vsel %vm346_vm11, %v343_v54, 0.0 }
 0x36b   :  { %v314_v55 = vpop.f32.mrf.mxu3 }
 0x36c   :  { %v344_v56 = vmul.f32 %v314_v55, %v497_v14 }
 0x36e   :  { %v348_v58 = vsel %vm346_vm11, %v344_v56, 0.0 }
 0x36f   :  { %v349_v59 = vadd.f32 %v348_v58, %v347_v57 }
 0x373   :  { %v317_v60 = vpop.f32.mrf.mxu3 }
 0x374   :  { %v345_v61 = vmul.f32 %v317_v60, %v515_v26  ;;  %414 = vmatpush.msk.msrb.mxu2 %vm201_vm12, %v317_v60 }
 0x376   :  { %v351_v62 = vsel %vm350_vm13, %v345_v61, 0.0  ;;  %337 = vmatpush.msrb.mxu2 %v314_v55 }
 0x377   :  { %v352_v63 = vadd.f32 %v351_v62, %v349_v59 }
 0x378   :  { %338 = vmatpush.msrb.mxu2 %v311_v53 }
 0x379   :  { %415 = vmatmul.msk.f32.vlgmr.msrb.gmra.mxu2 %vm197_vm9, %v181_v28  ;;  %v353_v1 = vrot.slane %v352_v63, 4 }
 0x37b   :  { %v354_v2 = vadd.f32 %v353_v1, %v352_v63 }
 0x37d   :  { %v355_v3 = vrot.slane %v354_v2, 2 }
 0x37f   :  { %v356_v4 = vadd.f32 %v355_v3, %v354_v2 }
 0x381   :  { %v357_v5 = vrot.slane %v356_v4, 1 }
 0x383   :  { %v358_v6 = vadd.f32 %v357_v5, %v356_v4 }
 0x385   :  { %v359_v7 = vmul.f32 %v358_v6, %v499_v15  ;;  %v360_v11 = vmul.f32 %v358_v6, %v497_v14  ;;  %v361_v15 = vmul.f32 %v358_v6, %v515_v26 }
 0x3fc   :  { %v340_v0 = vpop.f32.mrf.mxu2 }
 0x3fd   :  { %416 = vmatpush.msk.msra.mxu1 %vm30_vm2, %v340_v0 }
 0x3fe   :  { %417 = vmatmul.msk.f32.vlgmr.msra.gmra.mxu1 %vm20_vm1, %v505_v18 }
 0x406   :  { %418 = vmatmul.msk.f32.gmra.mxu1 %vm20_vm1, %v512_v24 }
 0x40e   :  { %419 = vmatmul.msk.f32.gmra.mxu1 %vm20_vm1, %v164_v27 }
 0x47b   :  { %v382_v8 = vpop.f32.mrf.mxu1 }
 0x47c   :  { %v383_v9 = vadd.f32 %v382_v8, %v359_v7 }
 0x47e   :  { %v391_v10 = vmax.f32 %v383_v9, 0.0 }
 0x480   :  { %394 = vst.msk [vmem:[%s571_s3] sm:$0xff] %vm346_vm11, %v391_v10 }
 0x483   :  { %v385_v12 = vpop.f32.mrf.mxu1 }
 0x484   :  { %v386_v13 = vadd.f32 %v385_v12, %v360_v11 }
 0x486   :  { %v392_v16 = vmax.f32 %v386_v13, 0.0 }
 0x488   :  { %395 = vst.msk [vmem:[%s571_s3 + $0x8] sm:$0xff] %vm346_vm11, %v392_v16 }
 0x48b   :  { %v388_v17 = vpop.f32.mrf.mxu1 }
 0x48c   :  { %v389_v18 = vadd.f32 %v388_v17, %v361_v15 }
 0x48e   :  { %v393_v19 = vmax.f32 %v389_v18, 0.0 }
 0x490   :  { %396 = vst.msk [vmem:[%s571_s3 + $0x10] sm:$0xf] %vm350_vm13, %v393_v19 }

</bundles_post_ra>
